<compile_context>
chip_gen: v5e
topology: v5e:2x2
jax: 0.10.0
libtpu: 0.0.40
codegen_flags: <defaults>
</compile_context>

<pallas_src>
import jax
import jax.numpy as jnp
from jax.experimental import pallas as pl
from jax.experimental.pallas import tpu as pltpu


def _round_up(x, m):
    return ((x + m - 1) // m) * m


def _hardswish(x):
    # PyTorch Hardswish: x * clamp(x + 3, 0, 6) / 6  (kept in f32 on all chips).
    return x * jnp.clip(x + 3.0, 0.0, 6.0) * (1.0 / 6.0)


def densenet_kernel(x1_ref, w1_ref, b1_ref, w2a_ref, w2b_ref, b2_ref, out_ref):
    x1 = x1_ref[...].astype(jnp.float32)                        # (TB, D)
    D = x1.shape[1]

    # dense1: Linear(D, D) + Hardswish
    y1 = jnp.dot(x1, w1_ref[...], preferred_element_type=jnp.float32) + b1_ref[...]
    h1 = _hardswish(y1)                                         # (TB, D)

    # dense2: Linear(2D, 2D) + Hardswish, with the concat folded into two
    # lane-contiguous matmuls: concat([x1, h1]) @ w2 == x1 @ w2[:D] + h1 @ w2[D:]
    y2 = (jnp.dot(x1, w2a_ref[...], preferred_element_type=jnp.float32)
          + jnp.dot(h1, w2b_ref[...], preferred_element_type=jnp.float32)
          + b2_ref[...])
    h2 = _hardswish(y2)                                         # (TB, 2D)

    # Assemble output [x1 | h1 | h2] with sliced stores (no concatenates).
    out_ref[:, 0:D] = x1.astype(out_ref.dtype)
    out_ref[:, D:2 * D] = h1.astype(out_ref.dtype)
    out_ref[:, 2 * D:4 * D] = h2.astype(out_ref.dtype)


def densenet_forward(x1, w1, b1, w2, b2, *, batch_tile=256):
    """x1: (B, D); w1: (D, D) [in, out]; b1: (D,); w2: (2D, 2D) [in, out]; b2: (2D,)."""
    B, D = x1.shape
    assert w1.shape == (D, D) and w2.shape == (2 * D, 2 * D)

    # Split w2 on the host so the kernel sees two lane-contiguous weight slabs.
    w2a = w2[:D, :]                 # multiplies x1  -> (D, 2D)
    w2b = w2[D:, :]                 # multiplies h1  -> (D, 2D)

    # Biases as (1, N) so the last-two-dims layout rules apply cleanly.
    b1_2d = b1.reshape(1, D)
    b2_2d = b2.reshape(1, 2 * D)

    # Batch tile: multiple of 8 (sublane), capped at `batch_tile`.
    TB = min(batch_tile, _round_up(B, 8))
    Bp = _round_up(B, TB)
    if Bp != B:
        x1 = jnp.pad(x1, ((0, Bp - B), (0, 0)))

    grid = (Bp // TB,)

    out = pl.pallas_call(
        densenet_kernel,
        out_shape=jax.ShapeDtypeStruct((Bp, 4 * D), x1.dtype),
        grid=grid,
        in_specs=[
            pl.BlockSpec((TB, D), lambda i: (i, 0)),        # x1 tile (pipelined)
            pl.BlockSpec((D, D), lambda i: (0, 0)),         # w1 (VMEM-resident)
            pl.BlockSpec((1, D), lambda i: (0, 0)),         # b1
            pl.BlockSpec((D, 2 * D), lambda i: (0, 0)),     # w2[:D]
            pl.BlockSpec((D, 2 * D), lambda i: (0, 0)),     # w2[D:]
            pl.BlockSpec((1, 2 * D), lambda i: (0, 0)),     # b2
        ],
        out_specs=pl.BlockSpec((TB, 4 * D), lambda i: (i, 0)),
        compiler_params=pltpu.CompilerParams(
            dimension_semantics=("parallel",)),
    )(x1, w1, b1_2d, w2a, w2b, b2_2d)

    return out[:B]


def densenet_reference(x1, w1, b1, w2, b2):
    hs = lambda x: x * jnp.clip(x + 3.0, 0.0, 6.0) / 6.0
    h1 = hs(x1 @ w1 + b1)
    x2 = jnp.concatenate([x1, h1], axis=1)
    h2 = hs(x2 @ w2 + b2)
    return jnp.concatenate([x2, h2], axis=1)


if __name__ == "__main__":
    lay_dim = 32     # D
    batch = 8        # B

    key = jax.random.PRNGKey(0)
    k_x, k_w1, k_b1, k_w2, k_b2 = jax.random.split(key, 5)

    # Deterministic parameter init (PyTorch Linear default: U(-1/sqrt(fan_in), 1/sqrt(fan_in))).
    bound1 = 1.0 / jnp.sqrt(lay_dim)
    bound2 = 1.0 / jnp.sqrt(2 * lay_dim)
    # Weights stored as (in_features, out_features), i.e. already transposed vs. PyTorch's (out, in).
    w1 = jax.random.uniform(k_w1, (lay_dim, lay_dim), jnp.float32, -bound1, bound1)
    b1 = jax.random.uniform(k_b1, (lay_dim,), jnp.float32, -bound1, bound1)
    w2 = jax.random.uniform(k_w2, (2 * lay_dim, 2 * lay_dim), jnp.float32, -bound2, bound2)
    b2 = jax.random.uniform(k_b2, (2 * lay_dim,), jnp.float32, -bound2, bound2)

    x1 = jax.random.normal(k_x, (batch, lay_dim), jnp.float32)

    out = densenet_forward(x1, w1, b1, w2, b2)
    out = jax.block_until_ready(out)

    ref = densenet_reference(x1, w1, b1, w2, b2)
    assert out.shape == (batch, 4 * lay_dim), out.shape
    assert jnp.allclose(out, ref, atol=1e-5, rtol=1e-5), "mismatch vs reference"

    print("KERNEL_OK")
</pallas_src>

<mosaic_0001>
module attributes {stable_mosaic.version = 11 : i64} {
  func.func @densenet_kernel(%arg0: i32, %arg1: memref<8x32xf32, #tpu.memory_space<vmem>>, %arg2: memref<32x32xf32, #tpu.memory_space<vmem>>, %arg3: memref<1x32xf32, #tpu.memory_space<vmem>>, %arg4: memref<32x64xf32, #tpu.memory_space<vmem>>, %arg5: memref<32x64xf32, #tpu.memory_space<vmem>>, %arg6: memref<1x64xf32, #tpu.memory_space<vmem>>, %arg7: memref<8x128xf32, #tpu.memory_space<vmem>>) attributes {dimension_semantics = [#tpu.dimension_semantics<parallel>], iteration_bounds = array<i64: 1>, scalar_prefetch = 0 : i64, scratch_operands = 0 : i64, tpu.core_type = #tpu.core_type<tc>, window_params = [{transform_indices = @transform_0, window_bounds = array<i64: 8, 32>}, {pipeline_mode = #tpu.pipeline_mode<synchronous>, transform_indices = @transform_1, window_bounds = array<i64: 32, 32>}, {pipeline_mode = #tpu.pipeline_mode<synchronous>, transform_indices = @transform_2, window_bounds = array<i64: 1, 32>}, {pipeline_mode = #tpu.pipeline_mode<synchronous>, transform_indices = @transform_3, window_bounds = array<i64: 32, 64>}, {pipeline_mode = #tpu.pipeline_mode<synchronous>, transform_indices = @transform_4, window_bounds = array<i64: 32, 64>}, {pipeline_mode = #tpu.pipeline_mode<synchronous>, transform_indices = @transform_5, window_bounds = array<i64: 1, 64>}, {transform_indices = @transform_6, window_bounds = array<i64: 8, 128>}]} {
    %c0 = arith.constant 0 : index
    %c0_0 = arith.constant 0 : index
    %0 = vector.load %arg1[%c0, %c0_0] : memref<8x32xf32, #tpu.memory_space<vmem>>, vector<8x32xf32>
    %c0_1 = arith.constant 0 : index
    %c0_2 = arith.constant 0 : index
    %1 = vector.load %arg2[%c0_1, %c0_2] : memref<32x32xf32, #tpu.memory_space<vmem>>, vector<32x32xf32>
    %cst = arith.constant dense<0.000000e+00> : vector<8x32xf32>
    %2 = tpu.matmul %0, %1, %cst {dimension_numbers = #tpu.dot_dimension_numbers<[1], [0], [0], [1], [0, 0, 1, 1], [], []>} : vector<8x32xf32>, vector<32x32xf32>, vector<8x32xf32> -> vector<8x32xf32>
    %c0_3 = arith.constant 0 : index
    %c0_4 = arith.constant 0 : index
    %3 = vector.load %arg3[%c0_3, %c0_4] : memref<1x32xf32, #tpu.memory_space<vmem>>, vector<1x32xf32>
    %4 = vector.broadcast %3 : vector<1x32xf32> to vector<8x32xf32>
    %5 = arith.addf %2, %4 : vector<8x32xf32>
    %cst_5 = arith.constant 3.000000e+00 : f32
    %6 = vector.broadcast %cst_5 : f32 to vector<8x32xf32>
    %7 = arith.addf %5, %6 : vector<8x32xf32>
    %cst_6 = arith.constant 0.000000e+00 : f32
    %cst_7 = arith.constant 6.000000e+00 : f32
    %8 = vector.broadcast %cst_6 : f32 to vector<8x32xf32>
    %9 = arith.maximumf %8, %7 : vector<8x32xf32>
    %10 = vector.broadcast %cst_7 : f32 to vector<8x32xf32>
    %11 = arith.minimumf %10, %9 : vector<8x32xf32>
    %12 = arith.mulf %5, %11 : vector<8x32xf32>
    %cst_8 = arith.constant 0.166666672 : f32
    %13 = vector.broadcast %cst_8 : f32 to vector<8x32xf32>
    %14 = arith.mulf %12, %13 : vector<8x32xf32>
    %c0_9 = arith.constant 0 : index
    %c0_10 = arith.constant 0 : index
    %15 = vector.load %arg4[%c0_9, %c0_10] : memref<32x64xf32, #tpu.memory_space<vmem>>, vector<32x64xf32>
    %cst_11 = arith.constant dense<0.000000e+00> : vector<8x64xf32>
    %16 = tpu.matmul %0, %15, %cst_11 {dimension_numbers = #tpu.dot_dimension_numbers<[1], [0], [0], [1], [0, 0, 1, 1], [], []>} : vector<8x32xf32>, vector<32x64xf32>, vector<8x64xf32> -> vector<8x64xf32>
    %c0_12 = arith.constant 0 : index
    %c0_13 = arith.constant 0 : index
    %17 = vector.load %arg5[%c0_12, %c0_13] : memref<32x64xf32, #tpu.memory_space<vmem>>, vector<32x64xf32>
    %cst_14 = arith.constant dense<0.000000e+00> : vector<8x64xf32>
    %18 = tpu.matmul %14, %17, %cst_14 {dimension_numbers = #tpu.dot_dimension_numbers<[1], [0], [0], [1], [0, 0, 1, 1], [], []>} : vector<8x32xf32>, vector<32x64xf32>, vector<8x64xf32> -> vector<8x64xf32>
    %19 = arith.addf %16, %18 : vector<8x64xf32>
    %c0_15 = arith.constant 0 : index
    %c0_16 = arith.constant 0 : index
    %20 = vector.load %arg6[%c0_15, %c0_16] : memref<1x64xf32, #tpu.memory_space<vmem>>, vector<1x64xf32>
    %21 = vector.broadcast %20 : vector<1x64xf32> to vector<8x64xf32>
    %22 = arith.addf %19, %21 : vector<8x64xf32>
    %cst_17 = arith.constant 3.000000e+00 : f32
    %23 = vector.broadcast %cst_17 : f32 to vector<8x64xf32>
    %24 = arith.addf %22, %23 : vector<8x64xf32>
    %cst_18 = arith.constant 0.000000e+00 : f32
    %cst_19 = arith.constant 6.000000e+00 : f32
    %25 = vector.broadcast %cst_18 : f32 to vector<8x64xf32>
    %26 = arith.maximumf %25, %24 : vector<8x64xf32>
    %27 = vector.broadcast %cst_19 : f32 to vector<8x64xf32>
    %28 = arith.minimumf %27, %26 : vector<8x64xf32>
    %29 = arith.mulf %22, %28 : vector<8x64xf32>
    %cst_20 = arith.constant 0.166666672 : f32
    %30 = vector.broadcast %cst_20 : f32 to vector<8x64xf32>
    %31 = arith.mulf %29, %30 : vector<8x64xf32>
    %c0_21 = arith.constant 0 : index
    %c0_22 = arith.constant 0 : index
    %32 = vector.load %arg7[%c0_21, %c0_22] : memref<8x128xf32, #tpu.memory_space<vmem>>, vector<8x32xf32>
    tpu.vector_store %arg7[%c0_21, %c0_22], %0 {strides = array<i32>} : memref<8x128xf32, #tpu.memory_space<vmem>>, vector<8x32xf32>,
    %c0_23 = arith.constant 0 : index
    %c32 = arith.constant 32 : index
    %33 = vector.load %arg7[%c0_23, %c32] : memref<8x128xf32, #tpu.memory_space<vmem>>, vector<8x32xf32>
    tpu.vector_store %arg7[%c0_23, %c32], %14 {strides = array<i32>} : memref<8x128xf32, #tpu.memory_space<vmem>>, vector<8x32xf32>,
    %c0_24 = arith.constant 0 : index
    %c64 = arith.constant 64 : index
    %34 = vector.load %arg7[%c0_24, %c64] : memref<8x128xf32, #tpu.memory_space<vmem>>, vector<8x64xf32>
    tpu.vector_store %arg7[%c0_24, %c64], %31 {strides = array<i32>} : memref<8x128xf32, #tpu.memory_space<vmem>>, vector<8x64xf32>,
    return
  }
  func.func @transform_0(%arg0: i32) -> (i32, i32) {
    %c0_i32 = arith.constant 0 : i32
    %c0_i32_0 = arith.constant 0 : i32
    return %arg0, %c0_i32 : i32, i32
  }
  func.func @transform_1(%arg0: i32) -> (i32, i32) {
    %c0_i32 = arith.constant 0 : i32
    %c0_i32_0 = arith.constant 0 : i32
    %c0_i32_1 = arith.constant 0 : i32
    return %c0_i32, %c0_i32_0 : i32, i32
  }
  func.func @transform_2(%arg0: i32) -> (i32, i32) {
    %c0_i32 = arith.constant 0 : i32
    %c0_i32_0 = arith.constant 0 : i32
    %c0_i32_1 = arith.constant 0 : i32
    return %c0_i32, %c0_i32_0 : i32, i32
  }
  func.func @transform_3(%arg0: i32) -> (i32, i32) {
    %c0_i32 = arith.constant 0 : i32
    %c0_i32_0 = arith.constant 0 : i32
    %c0_i32_1 = arith.constant 0 : i32
    return %c0_i32, %c0_i32_0 : i32, i32
  }
  func.func @transform_4(%arg0: i32) -> (i32, i32) {
    %c0_i32 = arith.constant 0 : i32
    %c0_i32_0 = arith.constant 0 : i32
    %c0_i32_1 = arith.constant 0 : i32
    return %c0_i32, %c0_i32_0 : i32, i32
  }
  func.func @transform_5(%arg0: i32) -> (i32, i32) {
    %c0_i32 = arith.constant 0 : i32
    %c0_i32_0 = arith.constant 0 : i32
    %c0_i32_1 = arith.constant 0 : i32
    return %c0_i32, %c0_i32_0 : i32, i32
  }
  func.func @transform_6(%arg0: i32) -> (i32, i32) {
    %c0_i32 = arith.constant 0 : i32
    %c0_i32_0 = arith.constant 0 : i32
    return %arg0, %c0_i32 : i32, i32
  }
}

</mosaic_0001>

<bundles_post_ra>
// kernel: tpu_custom_call.1
= control target key start
LH: loop header
LB: loop body
LE: loop exit
PB: predicated region body
PF: predicated region fallthrough
CT: control target
= control target key end

     0   :  { %11 = vsyncpa [#allocation3], 0  ;;  %s426_s0 = inlined_call_operand.hbm [shape: f32[8,32], index: 0, kind: input, shape index: {}]   ;;  %s427_s1 = inlined_call_operand.hbm [shape: f32[32,32], index: 1, kind: input, shape index: {}]   ;;  %s428_s2 = inlined_call_operand.vmem [shape: f32[1,32], index: 2, kind: input, shape index: {}]   ;;  %s429_s3 = inlined_call_operand.hbm [shape: f32[32,64], index: 3, kind: input, shape index: {}]   ;;  %s430_s4 = inlined_call_operand.hbm [shape: f32[32,64], index: 4, kind: input, shape index: {}]   ;;  %s431_s5 = inlined_call_operand.vmem [shape: f32[1,64], index: 5, kind: input, shape index: {}]   ;;  %s432_s6 = inlined_call_operand.hbm [shape: f32[8,128], index: 6, kind: output, shape index: {}]  }
   0x1   :  { %12 = vsyncpa [#allocation6], 0 }
   0x2   :  { %13 = vsyncpa [#allocation9], 0  ;;  %s30_s23 = sshll.u32 %s427_s1, 4  ;;  %s31_s23 = int_to_ptr.hbm [resolvable:$true] %s30_s23 }
   0x3   :  { %14 = vsyncpa [#allocation4], 0  ;;  %s357_s24 = smov [#allocation5]   ;;  %s20_s28 = sshll.u32 %s426_s0, 4  ;;  %s21_s28 = int_to_ptr.hbm [resolvable:$true] %s20_s28 }
   0x4   :  { %s32_s25 = sshll.u32 %s357_s24, 4  ;;  %s358_s29 = smov 128   ;;  %s33_s25 = int_to_ptr.vmem [resolvable:$true] %s32_s25 }
   0x5   :  { %s359_s30 = smov 8   ;;  %s360_s7 = smov [#allocation2]  }
   0x6   :  { %38 = dma.hbm_to_vmem [thread:$0]  %s31_s23, 512, %s33_s25, [#allocation6], %s358_s29, %s358_s29, %s359_s30  }
   0x7   :  { %s22_s8 = sshll.u32 %s360_s7, 4  ;;  %s45_s11 = sshll.u32 %s429_s3, 4  ;;  %s23_s8 = int_to_ptr.vmem [resolvable:$true] %s22_s8  ;;  %s46_s11 = int_to_ptr.hbm [resolvable:$true] %s45_s11 }
   0x8   :  { %25 = dma.hbm_to_vmem [thread:$0]  %s21_s28, 128, %s23_s8, [#allocation3]  }
   0x9   :  { %s58_s13 = sshll.u32 %s430_s4, 4  ;;  %s361_s14 = smov [#allocation7]   ;;  %s59_s13 = int_to_ptr.hbm [resolvable:$true] %s58_s13 }
   0xa   :  { %s47_s15 = sshll.u32 %s361_s14, 4  ;;  %s362_s0 = smov [#allocation8]   ;;  %s48_s15 = int_to_ptr.vmem [resolvable:$true] %s47_s15 }
   0xb   :  { %53 = dma.hbm_to_vmem [thread:$0]  %s46_s11, 512, %s48_s15, [#allocation6], %s358_s29, %s358_s29, %s359_s30  }
   0xc   :  { %s60_s16 = sshll.u32 %s362_s0, 4  ;;  %s61_s16 = int_to_ptr.vmem [resolvable:$true] %s60_s16 }
   0xd   :  { %66 = dma.hbm_to_vmem [thread:$0]  %s59_s13, 512, %s61_s16, [#allocation9], %s358_s29, %s358_s29, %s359_s30  }
   0xe   :  { %349 = dma.done.wait [#allocation3], 128  }
   0xf   :  { %350 = vsyncadd [#allocation3], 4294967168 }
  0x10   :  { %351 = dma.done.wait [#allocation6], 1024  }
  0x11   :  { %352 = vsyncadd [#allocation6], 4294966272 }
  0x12   :  { %353 = dma.done.wait [#allocation9], 512  }
  0x13   :  { %354 = vsyncadd [#allocation9], 4294966784  ;;  %v89_v0 = vld [vmem:[#allocation5 + $0x18] sm:$0xff]  ;;  %v88_v1 = vld [vmem:[#allocation5 + $0x10] sm:$0xff]  ;;  %vm94_vm0 = vcmask 261120   ;;  %s363_s17 = smov 32  }
  0x14   :  { %110 = vmatpush.msra.mxu0 %v89_v0  ;;  %v85_v2 = vld [vmem:[#allocation2] sm:$0xff]  ;;  %v87_v3 = vld [vmem:[#allocation5 + $0x8] sm:$0xff]  ;;  %v86_v4 = vld [vmem:[#allocation5] sm:$0xff]  ;;  %vm188_vm1 = vcmask 523520   ;;  %s365_s20 = smov [#allocation10]   ;;  %s203_s24 = sshll.u32 %s432_s6, 4  ;;  %s204_s24 = int_to_ptr.hbm [resolvable:$true] %s203_s24 }
  0x15   :  { %184 = vst.msk [vmem:[#allocation10] sm:$0xff] %vm94_vm0, %v85_v2  ;;  %v126_v5 = vld [vmem:[#allocation7 + $0x18] sm:$0xff]  ;;  %v125_v6 = vld [vmem:[#allocation7 + $0x10] sm:$0xff]  ;;  %v124_v7 = vld [vmem:[#allocation7 + $0x8] sm:$0xff]  ;;  %s201_s21 = sshll.u32 %s365_s20, 4  ;;  %vm194_vm2 = vcmask 1048064   ;;  %s202_s21 = int_to_ptr.vmem [resolvable:$true] %s201_s21 }
  0x16   :  { %111 = vmatpush.msra.mxu0 %v88_v1  ;;  %166 = vmatpush.msra.mxu2 %v126_v5  ;;  %v130_v8 = vld [vmem:[#allocation8 + $0x18] sm:$0xff]  ;;  %v123_v9 = vld [vmem:[#allocation7] sm:$0xff]  ;;  %v129_v10 = vld [vmem:[#allocation8 + $0x10] sm:$0xff] }
  0x17   :  { %146 = vmatpush.msra.mxu1 %v130_v8  ;;  %v128_v11 = vld [vmem:[#allocation8 + $0x8] sm:$0xff]  ;;  %v127_v12 = vld [vmem:[#allocation8] sm:$0xff]  ;;  %v227_v13 = vld [vmem:[%s428_s2] ss:$0 sm:$0xff]  ;;  %s364_s2 = smov 64  }
  0x18   :  { %112 = vmatpush.msra.mxu0 %v87_v3  ;;  %167 = vmatpush.msra.mxu2 %v125_v6  ;;  %v228_v23 = vld [vmem:[%s431_s5] ss:$0 sm:$0xff] }
  0x19   :  { %147 = vmatpush.msra.mxu1 %v129_v10 }
  0x1a   :  { %113 = vmatpush.msra.mxu0 %v86_v4  ;;  %168 = vmatpush.msra.mxu2 %v124_v7 }
  0x1b   :  { %215 = vmatmul.msk.f32.vlgmr.msra.gmra.mxu0 %vm94_vm0, %v85_v2  ;;  %148 = vmatpush.msra.mxu1 %v128_v11 }
  0x1c   :  { %169 = vmatpush.msra.mxu2 %v123_v9 }
  0x1d   :  { %217 = vmatmul.msk.f32.vlgmr.msra.gmra.mxu2 %vm94_vm0, %v85_v2  ;;  %149 = vmatpush.msra.mxu1 %v127_v12 }
  0x98   :  { %v115_v14 = vpop.f32.mrf.mxu0 }
  0x99   :  { %v116_v15 = vadd.f32 %v227_v13, %v115_v14 }
  0x9b   :  { %v118_v16 = vadd.f32 3.0, %v116_v15 }
  0x9d   :  { %v119_v17 = vmax.f32 %v118_v16, 0.0 }
  0x9f   :  { %v120_v18 = vmin.f32 %v119_v17, 6.0 }
  0xa0   :  { %v171_v22 = vpop.f32.mrf.mxu2 }
  0xa1   :  { %v121_v19 = vmul.f32 %v120_v18, %v116_v15 }
  0xa3   :  { %v122_v20 = vmul.f32 0.16666667, %v121_v19 }
  0xa5   :  { %185 = vrot.lane.b32.xlu0 %v122_v20, %s363_s17  ;;  %216 = vmatmul.msk.f32.vlgmr.msra.gmra.mxu1 %vm94_vm0, %v122_v20 }
 0x117   :  { %v186_v21 = vpop.permute.xlu0 %185 }
 0x118   :  { %189 = vst.msk [vmem:[#allocation10] sm:$0xff] %vm188_vm1, %v186_v21 }
 0x122   :  { %v151_v24 = vpop.f32.mrf.mxu1 }
 0x123   :  { %v172_v25 = vadd.f32 %v171_v22, %v151_v24 }
 0x125   :  { %v178_v26 = vadd.f32 %v228_v23, %v172_v25 }
 0x127   :  { %v179_v27 = vadd.f32 3.0, %v178_v26 }
 0x129   :  { %v180_v28 = vmax.f32 %v179_v27, 0.0 }
 0x12b   :  { %v181_v29 = vmin.f32 %v180_v28, 6.0 }
 0x12d   :  { %v182_v30 = vmul.f32 %v181_v29, %v178_v26 }
 0x12f   :  { %v183_v31 = vmul.f32 0.16666667, %v182_v30 }
 0x131   :  { %191 = vrot.lane.b32.xlu0 %v183_v31, %s364_s2 }
 0x1a3   :  { %v192_v32 = vpop.permute.xlu0 %191 }
 0x1a4   :  { %195 = vst.msk [vmem:[#allocation10] sm:$0xff] %vm194_vm2, %v192_v32 }
 0x1a5   :  { %206 = dma.vmem_to_hbm [thread:$0]  %s202_s21, 128, %s204_s24, [#allocation4]  }
 0x1a6   :  { %355 = dma.done.wait [#allocation4], 128  }
 0x1a7   :  { %356 = vsyncadd [#allocation4], 4294967168 }
 0x1a8   :  { %211 = vsyncpa [#allocation3], 1 }
 0x1a9   :  { %212 = vsyncpa [#allocation6], 1 }
 0x1aa   :  { %213 = vsyncpa [#allocation9], 1 }
 0x1ab   :  { %214 = vsyncpa [#allocation4], 1 }

</bundles_post_ra>
